<compile_context>
chip_gen: v7x
topology: tpu7x:2x2x1
jax: 0.10.0
libtpu: 0.0.40
codegen_flags: <defaults>
</compile_context>

<pallas_src>
import math
import functools

import jax
import jax.numpy as jnp
from jax.experimental import pallas as pl
from jax.experimental.pallas import tpu as pltpu

LANE = 128  # TPU lane width


def _round_up(x, m):
    return ((x + m - 1) // m) * m


def fcn_kernel(x_ref, w1_ref, b1_ref, wh_ref, bh_ref, wo_ref, bo_ref, out_ref):
    """One batch-tile of the full (padded) MLP forward pass, all layers fused.

    x_ref / w*_ref are bf16; accumulation is f32; biases, h and tanh stay f32.
    """
    # Input layer: Linear(N_INPUT -> H_pad) + tanh
    h = jnp.tanh(
        jnp.dot(x_ref[...], w1_ref[...], preferred_element_type=jnp.float32)
        + b1_ref[...]
    )
    # Hidden layers: (N_LAYERS - 1) x [Linear(H_pad -> H_pad) + tanh]
    # TODO(synk): for realistic hidden sizes (H >= ~1024) this Wh stack should be
    # a trailing "arbitrary" grid axis with h carried in VMEM scratch instead of
    # one big (double-buffered) block; at H_pad=128 the whole stack is tiny.
    n_hidden_layers = wh_ref.shape[0]
    for i in range(n_hidden_layers):  # static trip count, unrolled at trace time
        h = jnp.tanh(
            jnp.dot(h.astype(wh_ref.dtype), wh_ref[i],
                    preferred_element_type=jnp.float32)
            + bh_ref[i]
        )
    # Output layer: Linear(H_pad -> OUT_pad), no activation.  OUT_pad is a
    # multiple of 128 so this is a full-lane (unmasked) store.
    out_ref[...] = (
        jnp.dot(h.astype(wo_ref.dtype), wo_ref[...],
                preferred_element_type=jnp.float32)
        + bo_ref[...]
    ).astype(out_ref.dtype)


def init_fcn_params(key, n_input, n_output, n_hidden, n_layers, dtype=jnp.float32):
    """Deterministic init mimicking nn.Linear default (U[-1/sqrt(fan_in), +])."""
    keys = jax.random.split(key, 6)

    def uniform(k, shape, fan_in):
        bound = 1.0 / math.sqrt(fan_in)
        return jax.random.uniform(k, shape, dtype=dtype, minval=-bound, maxval=bound)

    # Stored already transposed: (in_features, out_features)
    w1 = uniform(keys[0], (n_input, n_hidden), n_input)
    b1 = uniform(keys[1], (1, n_hidden), n_input)
    wh = uniform(keys[2], (n_layers - 1, n_hidden, n_hidden), n_hidden)
    bh = uniform(keys[3], (n_layers - 1, 1, n_hidden), n_hidden)
    wo = uniform(keys[4], (n_hidden, n_output), n_hidden)
    bo = uniform(keys[5], (1, n_output), n_hidden)
    return w1, b1, wh, bh, wo, bo


@functools.partial(jax.jit, static_argnames=("block_m",))
def fcn_forward(x, w1, b1, wh, bh, wo, bo, *, block_m=256):
    batch, n_input = x.shape
    n_hidden = w1.shape[1]
    n_output = wo.shape[1]
    n_hidden_layers = wh.shape[0]

    # ---- lane padding (features -> multiples of 128) ----
    h_pad = _round_up(n_hidden, LANE)
    o_pad = _round_up(n_output, LANE)

    # ---- batch tiling ----
    bm = max(8, _round_up(min(block_m, batch), 8))
    # Prefer >= 2 grid steps so both TensorCores on a v7x chip get a tile
    # (grid axis is marked "parallel").
    if pl.cdiv(batch, bm) < 2 and batch >= 16:
        bm = max(8, _round_up(pl.cdiv(batch, 2), 8))
    batch_pad = _round_up(batch, bm)
    grid = (batch_pad // bm,)

    # ---- pad + cast operands (zero padding is self-consistent: tanh(0) = 0) ----
    cdt = jnp.bfloat16  # matmul operand dtype; accumulation stays f32
    xp = jnp.pad(x, ((0, batch_pad - batch), (0, 0))).astype(cdt)
    w1p = jnp.pad(w1, ((0, 0), (0, h_pad - n_hidden))).astype(cdt)
    b1p = jnp.pad(b1, ((0, 0), (0, h_pad - n_hidden))).astype(jnp.float32)
    whp = jnp.pad(wh, ((0, 0), (0, h_pad - n_hidden), (0, h_pad - n_hidden))).astype(cdt)
    bhp = jnp.pad(bh, ((0, 0), (0, 0), (0, h_pad - n_hidden))).astype(jnp.float32)
    wop = jnp.pad(wo, ((0, h_pad - n_hidden), (0, o_pad - n_output))).astype(cdt)
    bop = jnp.pad(bo, ((0, 0), (0, o_pad - n_output))).astype(jnp.float32)

    # Weight / bias blocks are grid-invariant (index_map constant), so Pallas
    # only DMAs them once per call; at H_pad=128 their VMEM footprint is tiny.
    out_padded = pl.pallas_call(
        fcn_kernel,
        out_shape=jax.ShapeDtypeStruct((batch_pad, o_pad), jnp.float32),
        grid=grid,
        in_specs=[
            pl.BlockSpec((bm, n_input), lambda i: (i, 0)),                      # x tile
            pl.BlockSpec((n_input, h_pad), lambda i: (0, 0)),                   # W1
            pl.BlockSpec((1, h_pad), lambda i: (0, 0)),                         # b1
            pl.BlockSpec((n_hidden_layers, h_pad, h_pad),
                         lambda i: (0, 0, 0)),                                  # Wh stack
            pl.BlockSpec((n_hidden_layers, 1, h_pad), lambda i: (0, 0, 0)),     # bh stack
            pl.BlockSpec((h_pad, o_pad), lambda i: (0, 0)),                     # Wo
            pl.BlockSpec((1, o_pad), lambda i: (0, 0)),                         # bo
        ],
        out_specs=pl.BlockSpec((bm, o_pad), lambda i: (i, 0)),
        compiler_params=pltpu.CompilerParams(
            dimension_semantics=("parallel",),
        ),
    )(xp, w1p, b1p, whp, bhp, wop, bop)

    # Strip batch + feature padding.
    return out_padded[:batch, :n_output]


def fcn_reference(x, w1, b1, wh, bh, wo, bo):
    """Pure-JAX f32 reference matching the PyTorch module semantics."""
    h = jnp.tanh(x @ w1 + b1)
    for i in range(wh.shape[0]):
        h = jnp.tanh(h @ wh[i] + bh[i])
    return h @ wo + bo


if __name__ == "__main__":
    # Small shapes consistent with the module's forward: x is (BATCH, N_INPUT)
    N_INPUT, N_OUTPUT, N_HIDDEN, N_LAYERS = 4, 2, 32, 3
    BATCH = 512  # two 256-row batch tiles -> 2 "parallel" grid steps

    key = jax.random.PRNGKey(0)
    key_x, key_p = jax.random.split(key)
    x = jax.random.normal(key_x, (BATCH, N_INPUT), dtype=jnp.float32)
    params = init_fcn_params(key_p, N_INPUT, N_OUTPUT, N_HIDDEN, N_LAYERS)

    y = fcn_forward(x, *params, block_m=256)
    jax.block_until_ready(y)

    y_ref = fcn_reference(x, *params)
    assert y.shape == (BATCH, N_OUTPUT)
    # bf16 matmul operands (f32 accumulation) -> loosened tolerance vs f32 ref.
    assert jnp.allclose(y, y_ref, atol=5e-2, rtol=5e-2), "mismatch vs reference"

    print("KERNEL_OK")
</pallas_src>

<mosaic_0001>
module attributes {stable_mosaic.version = 11 : i64} {
  func.func @fcn_kernel(%arg0: i32, %arg1: memref<256x4xbf16, #tpu.memory_space<vmem>>, %arg2: memref<4x128xbf16, #tpu.memory_space<vmem>>, %arg3: memref<1x128xf32, #tpu.memory_space<vmem>>, %arg4: memref<2x128x128xbf16, #tpu.memory_space<vmem>>, %arg5: memref<2x1x128xf32, #tpu.memory_space<vmem>>, %arg6: memref<128x128xbf16, #tpu.memory_space<vmem>>, %arg7: memref<1x128xf32, #tpu.memory_space<vmem>>, %arg8: memref<256x128xf32, #tpu.memory_space<vmem>>) attributes {dimension_semantics = [#tpu.dimension_semantics<parallel>], iteration_bounds = array<i64: 2>, scalar_prefetch = 0 : i64, scratch_operands = 0 : i64, tpu.core_type = #tpu.core_type<tc>, window_params = [{transform_indices = @transform_0, window_bounds = array<i64: 256, 4>}, {pipeline_mode = #tpu.pipeline_mode<synchronous>, transform_indices = @transform_1, window_bounds = array<i64: 4, 128>}, {pipeline_mode = #tpu.pipeline_mode<synchronous>, transform_indices = @transform_2, window_bounds = array<i64: 1, 128>}, {pipeline_mode = #tpu.pipeline_mode<synchronous>, transform_indices = @transform_3, window_bounds = array<i64: 2, 128, 128>}, {pipeline_mode = #tpu.pipeline_mode<synchronous>, transform_indices = @transform_4, window_bounds = array<i64: 2, 1, 128>}, {pipeline_mode = #tpu.pipeline_mode<synchronous>, transform_indices = @transform_5, window_bounds = array<i64: 128, 128>}, {pipeline_mode = #tpu.pipeline_mode<synchronous>, transform_indices = @transform_6, window_bounds = array<i64: 1, 128>}, {transform_indices = @transform_7, window_bounds = array<i64: 256, 128>}]} {
    %c0 = arith.constant 0 : index
    %c0_0 = arith.constant 0 : index
    %0 = vector.load %arg1[%c0, %c0_0] : memref<256x4xbf16, #tpu.memory_space<vmem>>, vector<256x4xbf16>
    %c0_1 = arith.constant 0 : index
    %c0_2 = arith.constant 0 : index
    %1 = vector.load %arg2[%c0_1, %c0_2] : memref<4x128xbf16, #tpu.memory_space<vmem>>, vector<4x128xbf16>
    %cst = arith.constant dense<0.000000e+00> : vector<256x128xf32>
    %2 = tpu.matmul %0, %1, %cst {dimension_numbers = #tpu.dot_dimension_numbers<[1], [0], [0], [1], [0, 0, 1, 1], [], []>} : vector<256x4xbf16>, vector<4x128xbf16>, vector<256x128xf32> -> vector<256x128xf32>
    %c0_3 = arith.constant 0 : index
    %c0_4 = arith.constant 0 : index
    %3 = vector.load %arg3[%c0_3, %c0_4] : memref<1x128xf32, #tpu.memory_space<vmem>>, vector<1x128xf32>
    %4 = vector.broadcast %3 : vector<1x128xf32> to vector<256x128xf32>
    %5 = arith.addf %2, %4 : vector<256x128xf32>
    %6 = math.tanh %5 : vector<256x128xf32>
    %7 = arith.truncf %6 : vector<256x128xf32> to vector<256x128xbf16>
    %c0_5 = arith.constant 0 : index
    %c0_6 = arith.constant 0 : index
    %c0_7 = arith.constant 0 : index
    %8 = vector.load %arg4[%c0_5, %c0_6, %c0_7] : memref<2x128x128xbf16, #tpu.memory_space<vmem>>, vector<1x128x128xbf16>
    %9 = vector.shape_cast %8 : vector<1x128x128xbf16> to vector<128x128xbf16>
    %cst_8 = arith.constant dense<0.000000e+00> : vector<256x128xf32>
    %10 = tpu.matmul %7, %9, %cst_8 {dimension_numbers = #tpu.dot_dimension_numbers<[1], [0], [0], [1], [0, 0, 1, 1], [], []>} : vector<256x128xbf16>, vector<128x128xbf16>, vector<256x128xf32> -> vector<256x128xf32>
    %c0_9 = arith.constant 0 : index
    %c0_10 = arith.constant 0 : index
    %c0_11 = arith.constant 0 : index
    %11 = vector.load %arg5[%c0_9, %c0_10, %c0_11] : memref<2x1x128xf32, #tpu.memory_space<vmem>>, vector<1x1x128xf32>
    %12 = vector.shape_cast %11 : vector<1x1x128xf32> to vector<1x128xf32>
    %13 = vector.broadcast %12 : vector<1x128xf32> to vector<256x128xf32>
    %14 = arith.addf %10, %13 : vector<256x128xf32>
    %15 = math.tanh %14 : vector<256x128xf32>
    %16 = arith.truncf %15 : vector<256x128xf32> to vector<256x128xbf16>
    %c1 = arith.constant 1 : index
    %c0_12 = arith.constant 0 : index
    %c0_13 = arith.constant 0 : index
    %17 = vector.load %arg4[%c1, %c0_12, %c0_13] : memref<2x128x128xbf16, #tpu.memory_space<vmem>>, vector<1x128x128xbf16>
    %18 = vector.shape_cast %17 : vector<1x128x128xbf16> to vector<128x128xbf16>
    %cst_14 = arith.constant dense<0.000000e+00> : vector<256x128xf32>
    %19 = tpu.matmul %16, %18, %cst_14 {dimension_numbers = #tpu.dot_dimension_numbers<[1], [0], [0], [1], [0, 0, 1, 1], [], []>} : vector<256x128xbf16>, vector<128x128xbf16>, vector<256x128xf32> -> vector<256x128xf32>
    %c1_15 = arith.constant 1 : index
    %c0_16 = arith.constant 0 : index
    %c0_17 = arith.constant 0 : index
    %20 = vector.load %arg5[%c1_15, %c0_16, %c0_17] : memref<2x1x128xf32, #tpu.memory_space<vmem>>, vector<1x1x128xf32>
    %21 = vector.shape_cast %20 : vector<1x1x128xf32> to vector<1x128xf32>
    %22 = vector.broadcast %21 : vector<1x128xf32> to vector<256x128xf32>
    %23 = arith.addf %19, %22 : vector<256x128xf32>
    %24 = math.tanh %23 : vector<256x128xf32>
    %25 = arith.truncf %24 : vector<256x128xf32> to vector<256x128xbf16>
    %c0_18 = arith.constant 0 : index
    %c0_19 = arith.constant 0 : index
    %26 = vector.load %arg6[%c0_18, %c0_19] : memref<128x128xbf16, #tpu.memory_space<vmem>>, vector<128x128xbf16>
    %cst_20 = arith.constant dense<0.000000e+00> : vector<256x128xf32>
    %27 = tpu.matmul %25, %26, %cst_20 {dimension_numbers = #tpu.dot_dimension_numbers<[1], [0], [0], [1], [0, 0, 1, 1], [], []>} : vector<256x128xbf16>, vector<128x128xbf16>, vector<256x128xf32> -> vector<256x128xf32>
    %c0_21 = arith.constant 0 : index
    %c0_22 = arith.constant 0 : index
    %28 = vector.load %arg7[%c0_21, %c0_22] : memref<1x128xf32, #tpu.memory_space<vmem>>, vector<1x128xf32>
    %29 = vector.broadcast %28 : vector<1x128xf32> to vector<256x128xf32>
    %30 = arith.addf %27, %29 : vector<256x128xf32>
    %c0_23 = arith.constant 0 : index
    %c0_24 = arith.constant 0 : index
    %31 = vector.load %arg8[%c0_23, %c0_24] : memref<256x128xf32, #tpu.memory_space<vmem>>, vector<256x128xf32>
    tpu.vector_store %arg8[%c0_23, %c0_24], %30 {strides = array<i32>} : memref<256x128xf32, #tpu.memory_space<vmem>>, vector<256x128xf32>,
    return
  }
  func.func @transform_0(%arg0: i32) -> (i32, i32) {
    %c0_i32 = arith.constant 0 : i32
    %c0_i32_0 = arith.constant 0 : i32
    return %arg0, %c0_i32 : i32, i32
  }
  func.func @transform_1(%arg0: i32) -> (i32, i32) {
    %c0_i32 = arith.constant 0 : i32
    %c0_i32_0 = arith.constant 0 : i32
    %c0_i32_1 = arith.constant 0 : i32
    return %c0_i32, %c0_i32_0 : i32, i32
  }
  func.func @transform_2(%arg0: i32) -> (i32, i32) {
    %c0_i32 = arith.constant 0 : i32
    %c0_i32_0 = arith.constant 0 : i32
    %c0_i32_1 = arith.constant 0 : i32
    return %c0_i32, %c0_i32_0 : i32, i32
  }
  func.func @transform_3(%arg0: i32) -> (i32, i32, i32) {
    %c0_i32 = arith.constant 0 : i32
    %c0_i32_0 = arith.constant 0 : i32
    %c0_i32_1 = arith.constant 0 : i32
    %c0_i32_2 = arith.constant 0 : i32
    return %c0_i32, %c0_i32_0, %c0_i32_1 : i32, i32, i32
  }
  func.func @transform_4(%arg0: i32) -> (i32, i32, i32) {
    %c0_i32 = arith.constant 0 : i32
    %c0_i32_0 = arith.constant 0 : i32
    %c0_i32_1 = arith.constant 0 : i32
    %c0_i32_2 = arith.constant 0 : i32
    return %c0_i32, %c0_i32_0, %c0_i32_1 : i32, i32, i32
  }
  func.func @transform_5(%arg0: i32) -> (i32, i32) {
    %c0_i32 = arith.constant 0 : i32
    %c0_i32_0 = arith.constant 0 : i32
    %c0_i32_1 = arith.constant 0 : i32
    return %c0_i32, %c0_i32_0 : i32, i32
  }
  func.func @transform_6(%arg0: i32) -> (i32, i32) {
    %c0_i32 = arith.constant 0 : i32
    %c0_i32_0 = arith.constant 0 : i32
    %c0_i32_1 = arith.constant 0 : i32
    return %c0_i32, %c0_i32_0 : i32, i32
  }
  func.func @transform_7(%arg0: i32) -> (i32, i32) {
    %c0_i32 = arith.constant 0 : i32
    %c0_i32_0 = arith.constant 0 : i32
    return %arg0, %c0_i32 : i32, i32
  }
}

</mosaic_0001>

<bundles_post_ra>
// kernel: fcn_forward.1
= control target key start
LH: loop header
LB: loop body
LE: loop exit
PB: predicated region body
PF: predicated region fallthrough
CT: control target
= control target key end

     0   :  { %s2207_s24 = smov 0   ;;  %s2543_s0 = inlined_call_operand.vmem [shape: bf16[512,4], index: 0, kind: input, shape index: {}]   ;;  %s2544_s1 = inlined_call_operand.vmem [shape: bf16[4,128], index: 1, kind: input, shape index: {}]   ;;  %s2545_s2 = inlined_call_operand.vmem [shape: f32[1,128], index: 2, kind: input, shape index: {}]   ;;  %s2546_s3 = inlined_call_operand.vmem [shape: bf16[2,128,128], index: 3, kind: input, shape index: {}]   ;;  %s2547_s4 = inlined_call_operand.vmem [shape: f32[2,1,128], index: 4, kind: input, shape index: {}]   ;;  %s2548_s5 = inlined_call_operand.vmem [shape: bf16[128,128], index: 5, kind: input, shape index: {}]   ;;  %s2549_s6 = inlined_call_operand.vmem [shape: f32[1,128], index: 6, kind: input, shape index: {}]   ;;  %s2550_s7 = inlined_call_operand.vmem [shape: f32[512,128], index: 7, kind: output, shape index: {}]  }
   0x1 LB: > { %s1547_s25 = sadd.s32 4294967295, %s2165_s24   ;;  %p1551_p0 = scmp.ge.s32.totalorder %s2165_s24, 1  ;;  %s2165_s24 = sphi %s2207_s24, %s17_s24  }
   0x2   : > { %p238_p1 = scmp.lt.s32.totalorder %s2165_s24, 3 }
   0x4   : > { %p239_p2 = pnand %p1551_p0, %p238_p1 }
   0x5   : > { %v315_v0 = vld [vmem:[%s2544_s1] sm:$0x3] (!%p239_p2)  ;;  %vm452_vm0 = vcmask (!%p239_p2), 1041408   ;;  %s1552_s28 = sshll.u32 (!%p239_p2), %s1547_s25, 5  ;;  %v1944_v3 = vld [vmem:[%s2546_s3 + $0x8] sm:$0xff] (!%p239_p2)   ;;  %v1945_v4 = vld [vmem:[%s2546_s3 + $0x10] sm:$0xff] (!%p239_p2)  }
   0x6   : > { %242 = sbr.rel (%p239_p2) target bundleno = 985 (0x3d9), region = 48  ;;  %v1943_v1 = vld [vmem:[%s2546_s3] sm:$0xff] (!%p239_p2)   ;;  %1918 = vmatprep.subr.msk.bf16.mxu0 (!%p239_p2), %vm452_vm0, %v315_v0  ;;  %v454_v2 = vsel (!%p239_p2), %vm452_vm0, %v315_v0, 0  ;;  %p271_p3 = scmp.lt.s32.totalorder (!%p239_p2), %s1552_s28, 63  ;;  %vm403_vm1 = vcmask (!%p239_p2), 31744   ;;  %v1946_v21 = vld [vmem:[%s2546_s3 + $0x18] sm:$0xff] (!%p239_p2)  }
   0x7   : > { %1725 = vmatpush3.bf16.msra.mxu0 (!%p239_p2), %v454_v2  ;;  %1758 = vmatprep.subr.bf16.mxu1 (!%p239_p2), %v1943_v1  ;;  %v1947_v22 = vld [vmem:[%s2546_s3 + $0x20] sm:$0xff] (!%p239_p2)   ;;  %v1948_v23 = vld [vmem:[%s2546_s3 + $0x28] sm:$0xff] (!%p239_p2)   ;;  %v1949_v24 = vld [vmem:[%s2546_s3 + $0x30] sm:$0xff] (!%p239_p2)  }
   0x8   : > { %1759 = vmatpush3.bf16.msra.mxu1 (!%p239_p2), %v1943_v1  ;;  %v1950_v25 = vld [vmem:[%s2546_s3 + $0x38] sm:$0xff] (!%p239_p2)   ;;  %v1951_v26 = vld [vmem:[%s2546_s3 + $0x40] sm:$0xff] (!%p239_p2)   ;;  %v1952_v27 = vld [vmem:[%s2546_s3 + $0x48] sm:$0xff] (!%p239_p2)  }
   0x9   : > { %1760 = vmatprep.subr.bf16.mxu1 (!%p239_p2), %v1944_v3  ;;  %1806 = vmatprep.subr.bf16.mxu0 (!%p239_p2), %v1951_v26  ;;  %v1953_v28 = vld [vmem:[%s2546_s3 + $0x50] sm:$0xff] (!%p239_p2)   ;;  %v1954_v29 = vld [vmem:[%s2546_s3 + $0x58] sm:$0xff] (!%p239_p2)   ;;  %v1955_v30 = vld [vmem:[%s2546_s3 + $0x60] sm:$0xff] (!%p239_p2)  }
   0xa   : > { %v1956_v31 = vld [vmem:[%s2546_s3 + $0x68] sm:$0xff] (!%p239_p2)   ;;  %v2303_v32 = vld [vmem:[%s2545_s2] ss:$0 sm:$0xff] (!%p239_p2) }
   0xc   : > { %1761 = vmatpush3.bf16.msra.mxu1 (!%p239_p2), %v1944_v3 }
   0xd   : > { %s2552_s28 = smov (!%p271_p3, %s1552_s28), 63  ;;  %1762 = vmatprep.subr.bf16.mxu1 %v1945_v4 }
   0xe   : > { %s1553_s12 = sshll.u32 %s2552_s28, 2  ;;  %s1555_s22 = sshll.u32 %s2552_s28, 3 }
   0xf   : > { %s2233_s15 = scalar_lea.vmem %s2543_s0, %s1553_s12  ;;  %s2474_s29 = scalar_lea.vmem %s2550_s7, %s1555_s22 }
  0x10   : > { %v1927_v5 = vld [vmem:[%s2233_s15] sm:$0xff]   ;;  %v1928_v6 = vld [vmem:[%s2233_s15 + $0x8] sm:$0xff]   ;;  %v1929_v7 = vld [vmem:[%s2233_s15 + $0x10] sm:$0xff]   ;;  %1763 = vmatpush3.bf16.msra.mxu1 %v1945_v4 }
  0x11   : > { %1726 = vmatprep.mubr.msk.bf16.mxu0 %vm403_vm1, %v1927_v5  ;;  %v1930_v8 = vld [vmem:[%s2233_s15 + $0x18] sm:$0xff]   ;;  %v1931_v9 = vld [vmem:[%s2233_s15 + $0x20] sm:$0xff]   ;;  %v1932_v10 = vld [vmem:[%s2233_s15 + $0x28] sm:$0xff]   ;;  %1764 = vmatprep.subr.bf16.mxu1 %v1946_v21 }
  0x12   : > { %1727 = vmatmul.mubr.msk.bf16.vlgmr.msra.gmra.mrb[0].mxu0 %vm403_vm1, %v1928_v6  ;;  %v1933_v11 = vld [vmem:[%s2233_s15 + $0x30] sm:$0xff]   ;;  %v1934_v12 = vld [vmem:[%s2233_s15 + $0x38] sm:$0xff]   ;;  %v1935_v13 = vld [vmem:[%s2233_s15 + $0x40] sm:$0xff]  }
  0x13   : > { %1730 = vmatprep.mubr.msk.bf16.mxu0 %vm403_vm1, %v1929_v7  ;;  %v1936_v14 = vld [vmem:[%s2233_s15 + $0x48] sm:$0xff]   ;;  %v1937_v15 = vld [vmem:[%s2233_s15 + $0x50] sm:$0xff]   ;;  %v1938_v16 = vld [vmem:[%s2233_s15 + $0x58] sm:$0xff]   ;;  %1807 = vmatpush3.bf16.msra.mxu0 %v1951_v26 }
  0x14   : > { %v1939_v17 = vld [vmem:[%s2233_s15 + $0x60] sm:$0xff]   ;;  %v1940_v18 = vld [vmem:[%s2233_s15 + $0x68] sm:$0xff]   ;;  %v1941_v19 = vld [vmem:[%s2233_s15 + $0x70] sm:$0xff]   ;;  %1765 = vmatpush3.bf16.msra.mxu1 %v1946_v21  ;;  %1808 = vmatprep.subr.bf16.mxu0 %v1952_v27 }
  0x15   : > { %v1942_v20 = vld [vmem:[%s2233_s15 + $0x78] sm:$0xff]   ;;  %1766 = vmatprep.subr.bf16.mxu1 %v1947_v22 }
  0x17   : > { %1809 = vmatpush3.bf16.msra.mxu0 %v1952_v27 }
  0x18   : > { %1767 = vmatpush3.bf16.msra.mxu1 %v1947_v22  ;;  %1810 = vmatprep.subr.bf16.mxu0 %v1953_v28 }
  0x19   : > { %1768 = vmatprep.subr.bf16.mxu1 %v1948_v23 }
  0x1a   : > { %1731 = vmatmul.mubr.msk.bf16.gmra.mrb[4].mxu0 %vm403_vm1, %v1930_v8 }
  0x1b   : > { %1734 = vmatprep.mubr.msk.bf16.mxu0 %vm403_vm1, %v1931_v9  ;;  %1811 = vmatpush3.bf16.msra.mxu0 %v1953_v28 }
  0x1c   : > { %1769 = vmatpush3.bf16.msra.mxu1 %v1948_v23  ;;  %1812 = vmatprep.subr.bf16.mxu0 %v1954_v29 }
  0x1d   : > { %1770 = vmatprep.subr.bf16.mxu1 %v1949_v24 }
  0x1f   : > { %1813 = vmatpush3.bf16.msra.mxu0 %v1954_v29 }
  0x20   : > { %1771 = vmatpush3.bf16.msra.mxu1 %v1949_v24  ;;  %1814 = vmatprep.subr.bf16.mxu0 %v1955_v30 }
  0x21   : > { %1772 = vmatprep.subr.bf16.mxu1 %v1950_v25 }
  0x22   : > { %1735 = vmatmul.mubr.msk.bf16.gmra.mrb[8].mxu0 %vm403_vm1, %v1932_v10 }
  0x23   : > { %1738 = vmatprep.mubr.msk.bf16.mxu0 %vm403_vm1, %v1933_v11  ;;  %1815 = vmatpush3.bf16.msra.mxu0 %v1955_v30 }
  0x24   : > { %1773 = vmatpush3.bf16.msra.mxu1 %v1950_v25  ;;  %1816 = vmatprep.subr.bf16.mxu0 %v1956_v31 }
  0x27   : > { %1817 = vmatpush3.bf16.msra.mxu0 %v1956_v31 }
  0x2a   : > { %1739 = vmatmul.mubr.msk.bf16.gmra.mrb[12].mxu0 %vm403_vm1, %v1934_v12 }
  0x2b   : > { %1742 = vmatprep.mubr.msk.bf16.mxu0 %vm403_vm1, %v1935_v13 }
  0x32   : > { %1743 = vmatmul.mubr.msk.bf16.gmra.mrb[16].mxu0 %vm403_vm1, %v1936_v14 }
  0x33   : > { %1746 = vmatprep.mubr.msk.bf16.mxu0 %vm403_vm1, %v1937_v15 }
  0x3a   : > { %1747 = vmatmul.mubr.msk.bf16.gmra.mrb[20].mxu0 %vm403_vm1, %v1938_v16 }
  0x3b   : > { %1750 = vmatprep.mubr.msk.bf16.mxu0 %vm403_vm1, %v1939_v17 }
  0x42   : > { %1751 = vmatmul.mubr.msk.bf16.gmra.mrb[24].mxu0 %vm403_vm1, %v1940_v18 }
  0x43   : > { %1754 = vmatprep.mubr.msk.bf16.mxu0 %vm403_vm1, %v1941_v19 }
  0x4a   : > { %1755 = vmatmul.mubr.msk.bf16.gmra.mrb[28].mxu0 %vm403_vm1, %v1942_v20 }
  0xe5   : > { %v1728_v33 = vpop.f32.mrb[0].mxu0 }
  0xe6   : > { %v499_v34 = vadd.f32 %v1728_v33, %v2303_v32  ;;  %v490_v35 = vpop.f32.mrb[1].mxu0 }
  0xe7   : > { %v491_v36 = vadd.f32 %v2303_v32, %v490_v35  ;;  %v1729_v37 = vpop.f32.mrb[2].mxu0 }
  0xe8   : > { %1967 = vtanh.f32 %v499_v34  ;;  %v502_v38 = vadd.f32 %v1729_v37, %v2303_v32  ;;  %v493_v39 = vpop.f32.mrb[3].mxu0 }
  0xe9   : > { %1969 = vtanh.f32 %v491_v36  ;;  %v494_v40 = vadd.f32 %v2303_v32, %v493_v39 }
  0xea   : > { %1971 = vtanh.f32 %v502_v38 }
  0xeb   : > { %1973 = vtanh.f32 %v494_v40 }
  0xed   : > { %v1732_v41 = vpop.f32.mrb[4].mxu0 }
  0xee   : > { %v515_v42 = vadd.f32 %v1732_v41, %v2303_v32  ;;  %v506_v43 = vpop.f32.mrb[5].mxu0 }
  0xef   : > { %v507_v44 = vadd.f32 %v2303_v32, %v506_v43  ;;  %v1733_v45 = vpop.f32.mrb[6].mxu0 }
  0xf0   : > { %1975 = vtanh.f32 %v515_v42  ;;  %v518_v46 = vadd.f32 %v1733_v45, %v2303_v32  ;;  %v509_v47 = vpop.f32.mrb[7].mxu0 }
  0xf1   : > { %1977 = vtanh.f32 %v507_v44  ;;  %v510_v48 = vadd.f32 %v2303_v32, %v509_v47 }
  0xf2   : > { %v1968_v49 = vpop.eup %1967  ;;  %1979 = vtanh.f32 %v518_v46 }
  0xf3   : > { %v1970_v50 = vpop.eup %1969  ;;  %1981 = vtanh.f32 %v510_v48 }
  0xf4   : > { %v1972_v51 = vpop.eup %1971 }
  0xf5   : > { %v1974_v52 = vpop.eup %1973  ;;  %v1736_v53 = vpop.f32.mrb[8].mxu0  ;;  %v650_v54 = vpack.c.bf16 %v1972_v51, %v1968_v49 }
  0xf6   : > { %v531_v55 = vadd.f32 %v1736_v53, %v2303_v32  ;;  %v522_v56 = vpop.f32.mrb[9].mxu0  ;;  %v649_v57 = vpack.c.bf16 %v1974_v52, %v1970_v50 }
  0xf7   : > { %v523_v58 = vadd.f32 %v2303_v32, %v522_v56  ;;  %v1737_v59 = vpop.f32.mrb[10].mxu0 }
  0xf8   : > { %1983 = vtanh.f32 %v531_v55  ;;  %v534_v60 = vadd.f32 %v1737_v59, %v2303_v32  ;;  %v525_v61 = vpop.f32.mrb[11].mxu0  ;;  %1774 = vmatprep.mubr.bf16.mxu1 %v649_v57 }
  0xf9   : > { %1985 = vtanh.f32 %v523_v58  ;;  %v526_v62 = vadd.f32 %v2303_v32, %v525_v61  ;;  %1775 = vmatmul.mubr.bf16.vlgmr.msra.gmra.mrb[0].mxu1 %v650_v54 }
  0xfa   : > { %v1976_v63 = vpop.eup %1975  ;;  %1987 = vtanh.f32 %v534_v60 }
  0xfb   : > { %v1978_v0 = vpop.eup %1977  ;;  %1989 = vtanh.f32 %v526_v62 }
  0xfc   : > { %v1980_v1 = vpop.eup %1979 }
  0xfd   : > { %v1982_v2 = vpop.eup %1981  ;;  %v1740_v3 = vpop.f32.mrb[12].mxu0  ;;  %v652_v4 = vpack.c.bf16 %v1980_v1, %v1976_v63 }
  0xfe   : > { %v547_v5 = vadd.f32 %v1740_v3, %v2303_v32  ;;  %v538_v6 = vpop.f32.mrb[13].mxu0  ;;  %v651_v7 = vpack.c.bf16 %v1982_v2, %v1978_v0 }
  0xff   : > { %v539_v8 = vadd.f32 %v2303_v32, %v538_v6  ;;  %v1741_v9 = vpop.f32.mrb[14].mxu0 }
 0x100   : > { %1991 = vtanh.f32 %v547_v5  ;;  %v550_v10 = vadd.f32 %v1741_v9, %v2303_v32  ;;  %v541_v11 = vpop.f32.mrb[15].mxu0  ;;  %1778 = vmatprep.mubr.bf16.mxu1 %v651_v7 }
 0x101   : > { %1993 = vtanh.f32 %v539_v8  ;;  %v542_v12 = vadd.f32 %v2303_v32, %v541_v11  ;;  %1779 = vmatmul.mubr.bf16.gmra.mrb[4].mxu1 %v652_v4 }
 0x102   : > { %v1984_v13 = vpop.eup %1983  ;;  %1995 = vtanh.f32 %v550_v10 }
 0x103   : > { %v1986_v14 = vpop.eup %1985  ;;  %1997 = vtanh.f32 %v542_v12 }
 0x104   : > { %v1988_v15 = vpop.eup %1987 }
 0x105   : > { %v1990_v16 = vpop.eup %1989  ;;  %v1744_v17 = vpop.f32.mrb[16].mxu0  ;;  %v654_v18 = vpack.c.bf16 %v1988_v15, %v1984_v13 }
 0x106   : > { %v563_v19 = vadd.f32 %v1744_v17, %v2303_v32  ;;  %v554_v20 = vpop.f32.mrb[17].mxu0  ;;  %v653_v21 = vpack.c.bf16 %v1990_v16, %v1986_v14 }
 0x107   : > { %v555_v22 = vadd.f32 %v2303_v32, %v554_v20  ;;  %v1745_v23 = vpop.f32.mrb[18].mxu0  ;;  %v2349_v20 = vld [vmem:[%s2548_s5 + $0x8] sm:$0xff]  }
 0x108   : > { %1999 = vtanh.f32 %v563_v19  ;;  %v566_v24 = vadd.f32 %v1745_v23, %v2303_v32  ;;  %v557_v25 = vpop.f32.mrb[19].mxu0  ;;  %1782 = vmatprep.mubr.bf16.mxu1 %v653_v21  ;;  %v1959_v19 = vld [vmem:[%s2548_s5] sm:$0xff]   ;;  %v2355_v21 = vld [vmem:[%s2548_s5 + $0x10] sm:$0xff]  }
 0x109   : > { %2001 = vtanh.f32 %v555_v22  ;;  %v558_v26 = vadd.f32 %v2303_v32, %v557_v25  ;;  %1783 = vmatmul.mubr.bf16.gmra.mrb[8].mxu1 %v654_v18  ;;  %v1958_v18 = vld [vmem:[%s2546_s3 + $0x78] sm:$0xff]   ;;  %1902 = vmatprep.subr.bf16.mxu1 %v1959_v19  ;;  %v2369_v23 = vld [vmem:[%s2548_s5 + $0x20] sm:$0xff]  }
 0x10a   : > { %v1992_v27 = vpop.eup %1991  ;;  %2003 = vtanh.f32 %v566_v24  ;;  %1910 = vmatpush3.bf16.msra.mxu1 %v1959_v19  ;;  %v2362_v22 = vld [vmem:[%s2548_s5 + $0x18] sm:$0xff]   ;;  %v2377_v24 = vld [vmem:[%s2547_s4] ss:$0 sm:$0xff] }
 0x10b   : > { %v1994_v28 = vpop.eup %1993  ;;  %2005 = vtanh.f32 %v558_v26  ;;  %1903 = vmatprep.subr.bf16.mxu1 %v2349_v20 }
 0x10c   : > { %v1996_v29 = vpop.eup %1995 }
 0x10d   : > { %v1998_v30 = vpop.eup %1997  ;;  %v1748_v31 = vpop.f32.mrb[20].mxu0  ;;  %v656_v33 = vpack.c.bf16 %v1996_v29, %v1992_v27 }
 0x10e   : > { %v579_v34 = vadd.f32 %v1748_v31, %v2303_v32  ;;  %v570_v35 = vpop.f32.mrb[21].mxu0  ;;  %v655_v36 = vpack.c.bf16 %v1998_v30, %v1994_v28  ;;  %1911 = vmatpush3.bf16.msra.mxu1 %v2349_v20 }
 0x10f   : > { %v571_v37 = vadd.f32 %v2303_v32, %v570_v35  ;;  %v1749_v38 = vpop.f32.mrb[22].mxu0  ;;  %1904 = vmatprep.subr.bf16.mxu1 %v2355_v21 }
 0x110   : > { %2007 = vtanh.f32 %v579_v34  ;;  %v582_v39 = vadd.f32 %v1749_v38, %v2303_v32  ;;  %v573_v40 = vpop.f32.mrb[23].mxu0  ;;  %1786 = vmatprep.mubr.bf16.mxu1 %v655_v36 }
 0x111   : > { %2009 = vtanh.f32 %v571_v37  ;;  %v574_v41 = vadd.f32 %v2303_v32, %v573_v40  ;;  %1787 = vmatmul.mubr.bf16.gmra.mrb[12].mxu1 %v656_v33 }
 0x112   : > { %v2000_v42 = vpop.eup %1999  ;;  %2011 = vtanh.f32 %v582_v39  ;;  %1912 = vmatpush3.bf16.msra.mxu1 %v2355_v21 }
 0x113   : > { %v2002_v43 = vpop.eup %2001  ;;  %2013 = vtanh.f32 %v574_v41  ;;  %1905 = vmatprep.subr.bf16.mxu1 %v2362_v22 }
 0x114   : > { %v2004_v44 = vpop.eup %2003 }
 0x115   : > { %v2006_v45 = vpop.eup %2005  ;;  %v1752_v46 = vpop.f32.mrb[24].mxu0  ;;  %v658_v47 = vpack.c.bf16 %v2004_v44, %v2000_v42 }
 0x116   : > { %v595_v48 = vadd.f32 %v1752_v46, %v2303_v32  ;;  %v586_v49 = vpop.f32.mrb[25].mxu0  ;;  %v657_v50 = vpack.c.bf16 %v2006_v45, %v2002_v43  ;;  %1913 = vmatpush3.bf16.msra.mxu1 %v2362_v22 }
 0x117   : > { %v587_v51 = vadd.f32 %v2303_v32, %v586_v49  ;;  %v1753_v52 = vpop.f32.mrb[26].mxu0  ;;  %1906 = vmatprep.subr.bf16.mxu1 %v2369_v23 }
 0x118   : > { %2015 = vtanh.f32 %v595_v48  ;;  %v598_v53 = vadd.f32 %v1753_v52, %v2303_v32  ;;  %v589_v54 = vpop.f32.mrb[27].mxu0  ;;  %1790 = vmatprep.mubr.bf16.mxu1 %v657_v50 }
 0x119   : > { %2017 = vtanh.f32 %v587_v51  ;;  %v590_v55 = vadd.f32 %v2303_v32, %v589_v54  ;;  %1791 = vmatmul.mubr.bf16.gmra.mrb[16].mxu1 %v658_v47 }
 0x11a   : > { %v2008_v56 = vpop.eup %2007  ;;  %2019 = vtanh.f32 %v598_v53  ;;  %1914 = vmatpush3.bf16.msra.mxu1 %v2369_v23 }
 0x11b   : > { %v2010_v57 = vpop.eup %2009  ;;  %2021 = vtanh.f32 %v590_v55 }
 0x11c   : > { %v2012_v58 = vpop.eup %2011 }
 0x11d   : > { %v2014_v59 = vpop.eup %2013  ;;  %v1756_v60 = vpop.f32.mrb[28].mxu0  ;;  %v660_v61 = vpack.c.bf16 %v2012_v58, %v2008_v56 }
 0x11e   : > { %v611_v62 = vadd.f32 %v1756_v60, %v2303_v32  ;;  %v602_v63 = vpop.f32.mrb[29].mxu0  ;;  %v659_v0 = vpack.c.bf16 %v2014_v59, %v2010_v57 }
 0x11f   : > { %v603_v1 = vadd.f32 %v2303_v32, %v602_v63  ;;  %v1757_v2 = vpop.f32.mrb[30].mxu0 }
 0x120   : > { %2023 = vtanh.f32 %v611_v62  ;;  %v614_v3 = vadd.f32 %v1757_v2, %v2303_v32  ;;  %v605_v4 = vpop.f32.mrb[31].mxu0  ;;  %1794 = vmatprep.mubr.bf16.mxu1 %v659_v0 }
 0x121   : > { %2025 = vtanh.f32 %v603_v1  ;;  %v606_v5 = vadd.f32 %v2303_v32, %v605_v4  ;;  %1795 = vmatmul.mubr.bf16.gmra.mrb[20].mxu1 %v660_v61  ;;  %v1957_v32 = vld [vmem:[%s2546_s3 + $0x70] sm:$0xff]  }
 0x122   : > { %v2016_v6 = vpop.eup %2015  ;;  %2027 = vtanh.f32 %v614_v3  ;;  %1818 = vmatprep.subr.bf16.mxu0 %v1957_v32 }
 0x123   : > { %v2018_v7 = vpop.eup %2017  ;;  %2029 = vtanh.f32 %v606_v5  ;;  %1819 = vmatpush3.bf16.msra.mxu0 %v1957_v32 }
 0x124   : > { %v2020_v8 = vpop.eup %2019  ;;  %1820 = vmatprep.subr.bf16.mxu0 %v1958_v18 }
 0x125   : > { %v2022_v9 = vpop.eup %2021  ;;  %v662_v10 = vpack.c.bf16 %v2020_v8, %v2016_v6 }
 0x126   : > { %v661_v11 = vpack.c.bf16 %v2022_v9, %v2018_v7 }
 0x127   : > { %1821 = vmatpush3.bf16.msra.mxu0 %v1958_v18 }
 0x128   : > { %1798 = vmatprep.mubr.bf16.mxu1 %v661_v11  ;;  %1854 = vmatprep.subr.bf16.mxu0 %v1959_v19 }
 0x129   : > { %1799 = vmatmul.mubr.bf16.gmra.mrb[24].mxu1 %v662_v10 }
 0x12a   : > { %v2024_v12 = vpop.eup %2023 }
 0x12b   : > { %v2026_v13 = vpop.eup %2025 }
 0x12c   : > { %v2028_v14 = vpop.eup %2027 }
 0x12d   : > { %v2030_v15 = vpop.eup %2029  ;;  %v664_v16 = vpack.c.bf16 %v2028_v14, %v2024_v12 }
 0x12e   : > { %v663_v17 = vpack.c.bf16 %v2030_v15, %v2026_v13 }
 0x130   : > { %1802 = vmatprep.mubr.bf16.mxu1 %v663_v17 }
 0x131   : > { %1803 = vmatmul.mubr.bf16.gmra.mrb[28].mxu1 %v664_v16 }
 0x1cc   : > { %v1776_v25 = vpop.f32.mrb[0].mxu1 }
 0x1cd   : > { %v779_v26 = vadd.f32 %v1776_v25, %v2377_v24  ;;  %v770_v27 = vpop.f32.mrb[1].mxu1 }
 0x1ce   : > { %v771_v28 = vadd.f32 %v2377_v24, %v770_v27  ;;  %v1777_v29 = vpop.f32.mrb[2].mxu1 }
 0x1cf   : > { %2031 = vtanh.f32 %v779_v26  ;;  %v782_v30 = vadd.f32 %v1777_v29, %v2377_v24  ;;  %v773_v31 = vpop.f32.mrb[3].mxu1 }
 0x1d0   : > { %2033 = vtanh.f32 %v771_v28  ;;  %v774_v33 = vadd.f32 %v2377_v24, %v773_v31 }
 0x1d1   : > { %2035 = vtanh.f32 %v782_v30 }
 0x1d2   : > { %2037 = vtanh.f32 %v774_v33 }
 0x1d4   : > { %v1780_v34 = vpop.f32.mrb[4].mxu1 }
 0x1d5   : > { %v795_v35 = vadd.f32 %v1780_v34, %v2377_v24  ;;  %v786_v36 = vpop.f32.mrb[5].mxu1 }
 0x1d6   : > { %v787_v37 = vadd.f32 %v2377_v24, %v786_v36  ;;  %v1781_v38 = vpop.f32.mrb[6].mxu1 }
 0x1d7   : > { %2039 = vtanh.f32 %v795_v35  ;;  %v798_v39 = vadd.f32 %v1781_v38, %v2377_v24  ;;  %v789_v40 = vpop.f32.mrb[7].mxu1 }
 0x1d8   : > { %2041 = vtanh.f32 %v787_v37  ;;  %v790_v41 = vadd.f32 %v2377_v24, %v789_v40 }
 0x1d9   : > { %v2032_v42 = vpop.eup %2031  ;;  %2043 = vtanh.f32 %v798_v39 }
 0x1da   : > { %v2034_v43 = vpop.eup %2033  ;;  %2045 = vtanh.f32 %v790_v41 }
 0x1db   : > { %v2036_v44 = vpop.eup %2035 }
 0x1dc   : > { %v2038_v45 = vpop.eup %2037  ;;  %v1784_v46 = vpop.f32.mrb[8].mxu1  ;;  %v930_v47 = vpack.c.bf16 %v2036_v44, %v2032_v42 }
 0x1dd   : > { %v811_v48 = vadd.f32 %v1784_v46, %v2377_v24  ;;  %v802_v49 = vpop.f32.mrb[9].mxu1  ;;  %v929_v50 = vpack.c.bf16 %v2038_v45, %v2034_v43 }
 0x1de   : > { %v803_v51 = vadd.f32 %v2377_v24, %v802_v49  ;;  %v1785_v52 = vpop.f32.mrb[10].mxu1 }
 0x1df   : > { %2047 = vtanh.f32 %v811_v48  ;;  %v814_v53 = vadd.f32 %v1785_v52, %v2377_v24  ;;  %v805_v54 = vpop.f32.mrb[11].mxu1  ;;  %1822 = vmatprep.mubr.bf16.mxu0 %v929_v50 }
 0x1e0   : > { %2049 = vtanh.f32 %v803_v51  ;;  %v806_v55 = vadd.f32 %v2377_v24, %v805_v54  ;;  %1823 = vmatmul.mubr.bf16.vlgmr.msra.gmra.mrb[32].mxu0 %v930_v47 }
 0x1e1   : > { %v2040_v56 = vpop.eup %2039  ;;  %2051 = vtanh.f32 %v814_v53  ;;  %1855 = vmatpush3.bf16.msra.mxu0 %v1959_v19 }
 0x1e2   : > { %v2042_v57 = vpop.eup %2041  ;;  %2053 = vtanh.f32 %v806_v55  ;;  %1856 = vmatprep.subr.bf16.mxu0 %v2349_v20 }
 0x1e3   : > { %v2044_v58 = vpop.eup %2043 }
 0x1e4   : > { %v2046_v59 = vpop.eup %2045  ;;  %v1788_v60 = vpop.f32.mrb[12].mxu1  ;;  %v932_v61 = vpack.c.bf16 %v2044_v58, %v2040_v56 }
 0x1e5   : > { %v827_v62 = vadd.f32 %v1788_v60, %v2377_v24  ;;  %v818_v63 = vpop.f32.mrb[13].mxu1  ;;  %v931_v0 = vpack.c.bf16 %v2046_v59, %v2042_v57  ;;  %1857 = vmatpush3.bf16.msra.mxu0 %v2349_v20 }
 0x1e6   : > { %v819_v1 = vadd.f32 %v2377_v24, %v818_v63  ;;  %v1789_v2 = vpop.f32.mrb[14].mxu1  ;;  %1858 = vmatprep.subr.bf16.mxu0 %v2355_v21 }
 0x1e7   : > { %2055 = vtanh.f32 %v827_v62  ;;  %v830_v3 = vadd.f32 %v1789_v2, %v2377_v24  ;;  %v821_v4 = vpop.f32.mrb[15].mxu1  ;;  %1826 = vmatprep.mubr.bf16.mxu0 %v931_v0 }
 0x1e8   : > { %2057 = vtanh.f32 %v819_v1  ;;  %v822_v5 = vadd.f32 %v2377_v24, %v821_v4  ;;  %1827 = vmatmul.mubr.bf16.gmra.mrb[36].mxu0 %v932_v61 }
 0x1e9   : > { %v2048_v6 = vpop.eup %2047  ;;  %2059 = vtanh.f32 %v830_v3  ;;  %1859 = vmatpush3.bf16.msra.mxu0 %v2355_v21 }
 0x1ea   : > { %v2050_v7 = vpop.eup %2049  ;;  %2061 = vtanh.f32 %v822_v5  ;;  %1860 = vmatprep.subr.bf16.mxu0 %v2362_v22 }
 0x1eb   : > { %v2052_v8 = vpop.eup %2051 }
 0x1ec   : > { %v2054_v9 = vpop.eup %2053  ;;  %v1792_v10 = vpop.f32.mrb[16].mxu1  ;;  %v934_v11 = vpack.c.bf16 %v2052_v8, %v2048_v6 }
 0x1ed   : > { %v843_v12 = vadd.f32 %v1792_v10, %v2377_v24  ;;  %v834_v13 = vpop.f32.mrb[17].mxu1  ;;  %v933_v14 = vpack.c.bf16 %v2054_v9, %v2050_v7  ;;  %1861 = vmatpush3.bf16.msra.mxu0 %v2362_v22 }
 0x1ee   : > { %v835_v15 = vadd.f32 %v2377_v24, %v834_v13  ;;  %v1793_v16 = vpop.f32.mrb[18].mxu1  ;;  %1862 = vmatprep.subr.bf16.mxu0 %v2369_v23  ;;  %v2431_v13 = vld [vmem:[%s2547_s4 + $0x1] ss:$0 sm:$0xff] }
 0x1ef   : > { %2063 = vtanh.f32 %v843_v12  ;;  %v846_v17 = vadd.f32 %v1793_v16, %v2377_v24  ;;  %v837_v32 = vpop.f32.mrb[19].mxu1  ;;  %1830 = vmatprep.mubr.bf16.mxu0 %v933_v14  ;;  %v1966_v12 = vld [vmem:[%s2548_s5 + $0x38] sm:$0xff]  }
 0x1f0   : > { %2065 = vtanh.f32 %v835_v15  ;;  %v838_v18 = vadd.f32 %v2377_v24, %v837_v32  ;;  %1831 = vmatmul.mubr.bf16.gmra.mrb[40].mxu0 %v934_v11  ;;  %v1965_v11 = vld [vmem:[%s2548_s5 + $0x30] sm:$0xff]  }
 0x1f1   : > { %v2056_v19 = vpop.eup %2055  ;;  %2067 = vtanh.f32 %v846_v17  ;;  %1863 = vmatpush3.bf16.msra.mxu0 %v2369_v23 }
 0x1f2   : > { %v2058_v20 = vpop.eup %2057  ;;  %2069 = vtanh.f32 %v838_v18 }
 0x1f3   : > { %v2060_v21 = vpop.eup %2059 }
 0x1f4   : > { %v2062_v22 = vpop.eup %2061  ;;  %v1796_v25 = vpop.f32.mrb[20].mxu1  ;;  %v936_v26 = vpack.c.bf16 %v2060_v21, %v2056_v19 }
 0x1f5   : > { %v859_v27 = vadd.f32 %v1796_v25, %v2377_v24  ;;  %v850_v28 = vpop.f32.mrb[21].mxu1  ;;  %v935_v29 = vpack.c.bf16 %v2062_v22, %v2058_v20 }
 0x1f6   : > { %v851_v30 = vadd.f32 %v2377_v24, %v850_v28  ;;  %v1797_v31 = vpop.f32.mrb[22].mxu1 }
 0x1f7   : > { %2071 = vtanh.f32 %v859_v27  ;;  %v862_v33 = vadd.f32 %v1797_v31, %v2377_v24  ;;  %v853_v34 = vpop.f32.mrb[23].mxu1  ;;  %1834 = vmatprep.mubr.bf16.mxu0 %v935_v29 }
 0x1f8   : > { %2073 = vtanh.f32 %v851_v30  ;;  %v854_v23 = vadd.f32 %v2377_v24, %v853_v34  ;;  %1835 = vmatmul.mubr.bf16.gmra.mrb[44].mxu0 %v936_v26 }
 0x1f9   : > { %v2064_v35 = vpop.eup %2063  ;;  %2075 = vtanh.f32 %v862_v33 }
 0x1fa   : > { %v2066_v36 = vpop.eup %2065  ;;  %2077 = vtanh.f32 %v854_v23 }
 0x1fb   : > { %v2068_v37 = vpop.eup %2067 }
 0x1fc   : > { %v2070_v38 = vpop.eup %2069  ;;  %v1800_v39 = vpop.f32.mrb[24].mxu1  ;;  %v938_v40 = vpack.c.bf16 %v2068_v37, %v2064_v35 }
 0x1fd   : > { %v875_v41 = vadd.f32 %v1800_v39, %v2377_v24  ;;  %v866_v42 = vpop.f32.mrb[25].mxu1  ;;  %v937_v43 = vpack.c.bf16 %v2070_v38, %v2066_v36 }
 0x1fe   : > { %v867_v44 = vadd.f32 %v2377_v24, %v866_v42  ;;  %v1801_v45 = vpop.f32.mrb[26].mxu1 }
 0x1ff   : > { %2079 = vtanh.f32 %v875_v41  ;;  %v878_v46 = vadd.f32 %v1801_v45, %v2377_v24  ;;  %v869_v47 = vpop.f32.mrb[27].mxu1  ;;  %1838 = vmatprep.mubr.bf16.mxu0 %v937_v43 }
 0x200   : > { %2081 = vtanh.f32 %v867_v44  ;;  %v870_v48 = vadd.f32 %v2377_v24, %v869_v47  ;;  %1839 = vmatmul.mubr.bf16.gmra.mrb[48].mxu0 %v938_v40 }
 0x201   : > { %v2072_v49 = vpop.eup %2071  ;;  %2083 = vtanh.f32 %v878_v46 }
 0x202   : > { %v2074_v50 = vpop.eup %2073  ;;  %2085 = vtanh.f32 %v870_v48 }
 0x203   : > { %v2076_v51 = vpop.eup %2075 }
 0x204   : > { %v2078_v52 = vpop.eup %2077  ;;  %v1804_v53 = vpop.f32.mrb[28].mxu1  ;;  %v940_v54 = vpack.c.bf16 %v2076_v51, %v2072_v49 }
 0x205   : > { %v891_v55 = vadd.f32 %v1804_v53, %v2377_v24  ;;  %v882_v56 = vpop.f32.mrb[29].mxu1  ;;  %v939_v57 = vpack.c.bf16 %v2078_v52, %v2074_v50 }
 0x206   : > { %v883_v58 = vadd.f32 %v2377_v24, %v882_v56  ;;  %v1805_v59 = vpop.f32.mrb[30].mxu1 }
 0x207   : > { %2087 = vtanh.f32 %v891_v55  ;;  %v894_v60 = vadd.f32 %v1805_v59, %v2377_v24  ;;  %v885_v61 = vpop.f32.mrb[31].mxu1  ;;  %1842 = vmatprep.mubr.bf16.mxu0 %v939_v57 }
 0x208   : > { %2089 = vtanh.f32 %v883_v58  ;;  %v886_v62 = vadd.f32 %v2377_v24, %v885_v61  ;;  %1843 = vmatmul.mubr.bf16.gmra.mrb[52].mxu0 %v940_v54  ;;  %v1964_v24 = vld [vmem:[%s2548_s5 + $0x28] sm:$0xff]  }
 0x209   : > { %v2080_v63 = vpop.eup %2079  ;;  %2091 = vtanh.f32 %v894_v60  ;;  %1907 = vmatprep.subr.bf16.mxu1 %v1964_v24  ;;  %1864 = vmatprep.subr.bf16.mxu0 %v1964_v24 }
 0x20a   : > { %v2082_v0 = vpop.eup %2081  ;;  %2093 = vtanh.f32 %v886_v62  ;;  %1915 = vmatpush3.bf16.msra.mxu1 %v1964_v24  ;;  %1865 = vmatpush3.bf16.msra.mxu0 %v1964_v24 }
 0x20b   : > { %v2084_v1 = vpop.eup %2083  ;;  %1908 = vmatprep.subr.bf16.mxu1 %v1965_v11  ;;  %1866 = vmatprep.subr.bf16.mxu0 %v1965_v11 }
 0x20c   : > { %v2086_v2 = vpop.eup %2085  ;;  %v942_v3 = vpack.c.bf16 %v2084_v1, %v2080_v63 }
 0x20d   : > { %v941_v4 = vpack.c.bf16 %v2086_v2, %v2082_v0 }
 0x20e   : > { %1916 = vmatpush3.bf16.msra.mxu1 %v1965_v11  ;;  %1867 = vmatpush3.bf16.msra.mxu0 %v1965_v11 }
 0x20f   : > { %1846 = vmatprep.mubr.bf16.mxu0 %v941_v4  ;;  %1868 = vmatprep.subr.bf16.mxu0 %v1966_v12 }
 0x210   : > { %1847 = vmatmul.mubr.bf16.gmra.mrb[56].mxu0 %v942_v3  ;;  %1909 = vmatprep.subr.bf16.mxu1 %v1966_v12 }
 0x211   : > { %v2088_v5 = vpop.eup %2087 }
 0x212   : > { %v2090_v6 = vpop.eup %2089  ;;  %1869 = vmatpush3.bf16.msra.mxu0 %v1966_v12  ;;  %1917 = vmatpush3.bf16.msra.mxu1 %v1966_v12 }
 0x213   : > { %v2092_v7 = vpop.eup %2091 }
 0x214   : > { %v2094_v8 = vpop.eup %2093  ;;  %v944_v9 = vpack.c.bf16 %v2092_v7, %v2088_v5 }
 0x215   : > { %v943_v10 = vpack.c.bf16 %v2094_v8, %v2090_v6 }
 0x217   : > { %1850 = vmatprep.mubr.bf16.mxu0 %v943_v10 }
 0x218   : > { %1851 = vmatmul.mubr.bf16.gmra.mrb[60].mxu0 %v944_v9 }
 0x2b3   : > { %v1824_v14 = vpop.f32.mrb[32].mxu0 }
 0x2b4   : > { %v1061_v15 = vadd.f32 %v1824_v14, %v2431_v13  ;;  %v1052_v16 = vpop.f32.mrb[33].mxu0 }
 0x2b5   : > { %v1053_v17 = vadd.f32 %v2431_v13, %v1052_v16  ;;  %v1825_v32 = vpop.f32.mrb[34].mxu0 }
 0x2b6   : > { %2095 = vtanh.f32 %v1061_v15  ;;  %v1064_v18 = vadd.f32 %v1825_v32, %v2431_v13  ;;  %v1055_v19 = vpop.f32.mrb[35].mxu0 }
 0x2b7   : > { %2097 = vtanh.f32 %v1053_v17  ;;  %v1056_v20 = vadd.f32 %v2431_v13, %v1055_v19 }
 0x2b8   : > { %2099 = vtanh.f32 %v1064_v18 }
 0x2b9   : > { %2101 = vtanh.f32 %v1056_v20 }
 0x2bb   : > { %v1828_v21 = vpop.f32.mrb[36].mxu0 }
 0x2bc   : > { %v1077_v22 = vadd.f32 %v1828_v21, %v2431_v13  ;;  %v1068_v25 = vpop.f32.mrb[37].mxu0 }
 0x2bd   : > { %v1069_v26 = vadd.f32 %v2431_v13, %v1068_v25  ;;  %v1829_v27 = vpop.f32.mrb[38].mxu0 }
 0x2be   : > { %2103 = vtanh.f32 %v1077_v22  ;;  %v1080_v28 = vadd.f32 %v1829_v27, %v2431_v13  ;;  %v1071_v29 = vpop.f32.mrb[39].mxu0 }
 0x2bf   : > { %2105 = vtanh.f32 %v1069_v26  ;;  %v1072_v30 = vadd.f32 %v2431_v13, %v1071_v29 }
 0x2c0   : > { %v2096_v31 = vpop.eup %2095  ;;  %2107 = vtanh.f32 %v1080_v28 }
 0x2c1   : > { %v2098_v33 = vpop.eup %2097  ;;  %2109 = vtanh.f32 %v1072_v30 }
 0x2c2   : > { %v2100_v34 = vpop.eup %2099 }
 0x2c3   : > { %v2102_v23 = vpop.eup %2101  ;;  %v1832_v35 = vpop.f32.mrb[40].mxu0  ;;  %v1212_v36 = vpack.c.bf16 %v2100_v34, %v2096_v31 }
 0x2c4   : > { %v1093_v37 = vadd.f32 %v1832_v35, %v2431_v13  ;;  %v1084_v38 = vpop.f32.mrb[41].mxu0  ;;  %v1211_v39 = vpack.c.bf16 %v2102_v23, %v2098_v33 }
 0x2c5   : > { %v1085_v40 = vadd.f32 %v2431_v13, %v1084_v38  ;;  %v1833_v41 = vpop.f32.mrb[42].mxu0 }
 0x2c6   : > { %2111 = vtanh.f32 %v1093_v37  ;;  %v1096_v42 = vadd.f32 %v1833_v41, %v2431_v13  ;;  %v1087_v43 = vpop.f32.mrb[43].mxu0  ;;  %1870 = vmatprep.mubr.bf16.mxu0 %v1211_v39 }
 0x2c7   : > { %2113 = vtanh.f32 %v1085_v40  ;;  %v1088_v44 = vadd.f32 %v2431_v13, %v1087_v43  ;;  %1871 = vmatmul.mubr.bf16.vlgmr.msra.gmra.mrb[64].mxu0 %v1212_v36 }
 0x2c8   : > { %v2104_v45 = vpop.eup %2103  ;;  %2115 = vtanh.f32 %v1096_v42 }
 0x2c9   : > { %v2106_v46 = vpop.eup %2105  ;;  %2117 = vtanh.f32 %v1088_v44 }
 0x2ca   : > { %v2108_v47 = vpop.eup %2107 }
 0x2cb   : > { %v2110_v48 = vpop.eup %2109  ;;  %v1836_v49 = vpop.f32.mrb[44].mxu0  ;;  %v1214_v50 = vpack.c.bf16 %v2108_v47, %v2104_v45 }
 0x2cc   : > { %v1109_v51 = vadd.f32 %v1836_v49, %v2431_v13  ;;  %v1100_v52 = vpop.f32.mrb[45].mxu0  ;;  %v1213_v53 = vpack.c.bf16 %v2110_v48, %v2106_v46 }
 0x2cd   : > { %v1101_v54 = vadd.f32 %v2431_v13, %v1100_v52  ;;  %v1837_v55 = vpop.f32.mrb[46].mxu0 }
 0x2ce   : > { %2119 = vtanh.f32 %v1109_v51  ;;  %v1112_v56 = vadd.f32 %v1837_v55, %v2431_v13  ;;  %v1103_v57 = vpop.f32.mrb[47].mxu0  ;;  %1874 = vmatprep.mubr.bf16.mxu1 %v1213_v53 }
 0x2cf   : > { %2121 = vtanh.f32 %v1101_v54  ;;  %v1104_v58 = vadd.f32 %v2431_v13, %v1103_v57  ;;  %1875 = vmatmul.mubr.bf16.vlgmr.msra.gmra.mrb[32].mxu1 %v1214_v50 }
 0x2d0   : > { %v2112_v59 = vpop.eup %2111  ;;  %2123 = vtanh.f32 %v1112_v56 }
 0x2d1   : > { %v2114_v60 = vpop.eup %2113  ;;  %2125 = vtanh.f32 %v1104_v58 }
 0x2d2   : > { %v2116_v61 = vpop.eup %2115 }
 0x2d3   : > { %v2118_v62 = vpop.eup %2117  ;;  %v1840_v63 = vpop.f32.mrb[48].mxu0  ;;  %v1216_v0 = vpack.c.bf16 %v2116_v61, %v2112_v59 }
 0x2d4   : > { %v1125_v1 = vadd.f32 %v1840_v63, %v2431_v13  ;;  %v1116_v2 = vpop.f32.mrb[49].mxu0  ;;  %v1215_v3 = vpack.c.bf16 %v2118_v62, %v2114_v60 }
 0x2d5   : > { %v1117_v4 = vadd.f32 %v2431_v13, %v1116_v2  ;;  %v1841_v5 = vpop.f32.mrb[50].mxu0 }
 0x2d6   : > { %2127 = vtanh.f32 %v1125_v1  ;;  %v1128_v6 = vadd.f32 %v1841_v5, %v2431_v13  ;;  %v1119_v7 = vpop.f32.mrb[51].mxu0  ;;  %1878 = vmatprep.mubr.bf16.mxu1 %v1215_v3 }
 0x2d7   : > { %2129 = vtanh.f32 %v1117_v4  ;;  %v1120_v8 = vadd.f32 %v2431_v13, %v1119_v7  ;;  %1879 = vmatmul.mubr.bf16.gmra.mrb[36].mxu1 %v1216_v0 }
 0x2d8   : > { %v2120_v9 = vpop.eup %2119  ;;  %2131 = vtanh.f32 %v1128_v6 }
 0x2d9   : > { %v2122_v10 = vpop.eup %2121  ;;  %2133 = vtanh.f32 %v1120_v8 }
 0x2da   : > { %v2124_v24 = vpop.eup %2123 }
 0x2db   : > { %v2126_v11 = vpop.eup %2125  ;;  %v1844_v12 = vpop.f32.mrb[52].mxu0  ;;  %v1218_v14 = vpack.c.bf16 %v2124_v24, %v2120_v9 }
 0x2dc   : > { %v1141_v15 = vadd.f32 %v1844_v12, %v2431_v13  ;;  %v1132_v16 = vpop.f32.mrb[53].mxu0  ;;  %v1217_v17 = vpack.c.bf16 %v2126_v11, %v2122_v10 }
 0x2dd   : > { %v1133_v32 = vadd.f32 %v2431_v13, %v1132_v16  ;;  %v1845_v18 = vpop.f32.mrb[54].mxu0 }
 0x2de   : > { %2135 = vtanh.f32 %v1141_v15  ;;  %v1144_v19 = vadd.f32 %v1845_v18, %v2431_v13  ;;  %v1135_v20 = vpop.f32.mrb[55].mxu0  ;;  %1882 = vmatprep.mubr.bf16.mxu1 %v1217_v17 }
 0x2df   : > { %2137 = vtanh.f32 %v1133_v32  ;;  %v1136_v21 = vadd.f32 %v2431_v13, %v1135_v20  ;;  %1883 = vmatmul.mubr.bf16.gmra.mrb[40].mxu1 %v1218_v14 }
 0x2e0   : > { %v2128_v22 = vpop.eup %2127  ;;  %2139 = vtanh.f32 %v1144_v19 }
 0x2e1   : > { %v2130_v25 = vpop.eup %2129  ;;  %2141 = vtanh.f32 %v1136_v21 }
 0x2e2   : > { %v2132_v26 = vpop.eup %2131 }
 0x2e3   : > { %v2134_v27 = vpop.eup %2133  ;;  %v1848_v28 = vpop.f32.mrb[56].mxu0  ;;  %v1220_v29 = vpack.c.bf16 %v2132_v26, %v2128_v22 }
 0x2e4   : > { %v1157_v30 = vadd.f32 %v1848_v28, %v2431_v13  ;;  %v1148_v31 = vpop.f32.mrb[57].mxu0  ;;  %v1219_v33 = vpack.c.bf16 %v2134_v27, %v2130_v25 }
 0x2e5   : > { %v1149_v34 = vadd.f32 %v2431_v13, %v1148_v31  ;;  %v1849_v23 = vpop.f32.mrb[58].mxu0 }
 0x2e6   : > { %2143 = vtanh.f32 %v1157_v30  ;;  %v1160_v35 = vadd.f32 %v1849_v23, %v2431_v13  ;;  %v1151_v36 = vpop.f32.mrb[59].mxu0  ;;  %1886 = vmatprep.mubr.bf16.mxu1 %v1219_v33 }
 0x2e7   : > { %2145 = vtanh.f32 %v1149_v34  ;;  %v1152_v37 = vadd.f32 %v2431_v13, %v1151_v36  ;;  %1887 = vmatmul.mubr.bf16.gmra.mrb[44].mxu1 %v1220_v29 }
 0x2e8   : > { %v2136_v38 = vpop.eup %2135  ;;  %2147 = vtanh.f32 %v1160_v35 }
 0x2e9   : > { %v2138_v39 = vpop.eup %2137  ;;  %2149 = vtanh.f32 %v1152_v37 }
 0x2ea   : > { %v2140_v40 = vpop.eup %2139 }
 0x2eb   : > { %v2142_v41 = vpop.eup %2141  ;;  %v1852_v42 = vpop.f32.mrb[60].mxu0  ;;  %v1222_v43 = vpack.c.bf16 %v2140_v40, %v2136_v38 }
 0x2ec   : > { %v1173_v44 = vadd.f32 %v1852_v42, %v2431_v13  ;;  %v1164_v45 = vpop.f32.mrb[61].mxu0  ;;  %v1221_v46 = vpack.c.bf16 %v2142_v41, %v2138_v39 }
 0x2ed   : > { %v1165_v47 = vadd.f32 %v2431_v13, %v1164_v45  ;;  %v1853_v48 = vpop.f32.mrb[62].mxu0 }
 0x2ee   : > { %2151 = vtanh.f32 %v1173_v44  ;;  %v1176_v49 = vadd.f32 %v1853_v48, %v2431_v13  ;;  %v1167_v50 = vpop.f32.mrb[63].mxu0  ;;  %1890 = vmatprep.mubr.bf16.mxu1 %v1221_v46 }
 0x2ef   : > { %2153 = vtanh.f32 %v1165_v47  ;;  %v1168_v51 = vadd.f32 %v2431_v13, %v1167_v50  ;;  %1891 = vmatmul.mubr.bf16.gmra.mrb[48].mxu1 %v1222_v43  ;;  %v2469_v13 = vld [vmem:[%s2549_s6] ss:$0 sm:$0xff] }
 0x2f0   : > { %v2144_v52 = vpop.eup %2143  ;;  %2155 = vtanh.f32 %v1176_v49 }
 0x2f1   : > { %v2146_v53 = vpop.eup %2145  ;;  %2157 = vtanh.f32 %v1168_v51 }
 0x2f2   : > { %v2148_v54 = vpop.eup %2147 }
 0x2f3   : > { %v2150_v55 = vpop.eup %2149  ;;  %v1224_v56 = vpack.c.bf16 %v2148_v54, %v2144_v52 }
 0x2f4   : > { %v1223_v57 = vpack.c.bf16 %v2150_v55, %v2146_v53 }
 0x2f6   : > { %1894 = vmatprep.mubr.bf16.mxu1 %v1223_v57 }
 0x2f7   : > { %1895 = vmatmul.mubr.bf16.gmra.mrb[52].mxu1 %v1224_v56 }
 0x2f8   : > { %v2152_v58 = vpop.eup %2151 }
 0x2f9   : > { %v2154_v59 = vpop.eup %2153 }
 0x2fa   : > { %v2156_v60 = vpop.eup %2155 }
 0x2fb   : > { %v2158_v61 = vpop.eup %2157  ;;  %v1226_v62 = vpack.c.bf16 %v2156_v60, %v2152_v58 }
 0x2fc   : > { %v1225_v63 = vpack.c.bf16 %v2158_v61, %v2154_v59 }
 0x2fe   : > { %1898 = vmatprep.mubr.bf16.mxu1 %v1225_v63 }
 0x2ff   : > { %1899 = vmatmul.mubr.bf16.gmra.mrb[56].mxu1 %v1226_v62 }
 0x39a   : > { %v1872_v0 = vpop.f32.mrb[64].mxu0 }
 0x39b   : > { %v1341_v1 = vadd.f32 %v1872_v0, %v2469_v13  ;;  %v1332_v2 = vpop.f32.mrb[65].mxu0 }
 0x39c   : > { %v1333_v3 = vadd.f32 %v2469_v13, %v1332_v2  ;;  %v1873_v4 = vpop.f32.mrb[66].mxu0 }
 0x39d   : > { %1461 = vst [vmem:[%s2474_s29 + $0x10] sm:$0xff] %v1341_v1  ;;  %v1344_v5 = vadd.f32 %v1873_v4, %v2469_v13  ;;  %v1335_v6 = vpop.f32.mrb[67].mxu0 }
 0x39e   : > { %1459 = vst [vmem:[%s2474_s29] sm:$0xff] %v1333_v3  ;;  %v1336_v7 = vadd.f32 %v2469_v13, %v1335_v6 }
 0x39f   : > { %1462 = vst [vmem:[%s2474_s29 + $0x18] sm:$0xff] %v1344_v5 }
 0x3a0   : > { %1460 = vst [vmem:[%s2474_s29 + $0x8] sm:$0xff] %v1336_v7 }
 0x3a2   : > { %v1876_v8 = vpop.f32.mrb[32].mxu1 }
 0x3a3   : > { %v1357_v9 = vadd.f32 %v1876_v8, %v2469_v13  ;;  %v1348_v10 = vpop.f32.mrb[33].mxu1 }
 0x3a4   : > { %v1349_v24 = vadd.f32 %v2469_v13, %v1348_v10  ;;  %v1877_v11 = vpop.f32.mrb[34].mxu1 }
 0x3a5   : > { %1465 = vst [vmem:[%s2474_s29 + $0x30] sm:$0xff] %v1357_v9  ;;  %v1360_v12 = vadd.f32 %v1877_v11, %v2469_v13  ;;  %v1351_v14 = vpop.f32.mrb[35].mxu1 }
 0x3a6   : > { %1463 = vst [vmem:[%s2474_s29 + $0x20] sm:$0xff] %v1349_v24  ;;  %v1352_v15 = vadd.f32 %v2469_v13, %v1351_v14 }
 0x3a7   : > { %1466 = vst [vmem:[%s2474_s29 + $0x38] sm:$0xff] %v1360_v12 }
 0x3a8   : > { %1464 = vst [vmem:[%s2474_s29 + $0x28] sm:$0xff] %v1352_v15 }
 0x3aa   : > { %v1880_v16 = vpop.f32.mrb[36].mxu1 }
 0x3ab   : > { %v1373_v17 = vadd.f32 %v1880_v16, %v2469_v13  ;;  %v1364_v32 = vpop.f32.mrb[37].mxu1 }
 0x3ac   : > { %v1365_v18 = vadd.f32 %v2469_v13, %v1364_v32  ;;  %v1881_v19 = vpop.f32.mrb[38].mxu1 }
 0x3ad   : > { %1469 = vst [vmem:[%s2474_s29 + $0x50] sm:$0xff] %v1373_v17  ;;  %v1376_v20 = vadd.f32 %v1881_v19, %v2469_v13  ;;  %v1367_v21 = vpop.f32.mrb[39].mxu1 }
 0x3ae   : > { %1467 = vst [vmem:[%s2474_s29 + $0x40] sm:$0xff] %v1365_v18  ;;  %v1368_v22 = vadd.f32 %v2469_v13, %v1367_v21 }
 0x3af   : > { %1470 = vst [vmem:[%s2474_s29 + $0x58] sm:$0xff] %v1376_v20 }
 0x3b0   : > { %1468 = vst [vmem:[%s2474_s29 + $0x48] sm:$0xff] %v1368_v22 }
 0x3b2   : > { %v1884_v25 = vpop.f32.mrb[40].mxu1 }
 0x3b3   : > { %v1389_v26 = vadd.f32 %v1884_v25, %v2469_v13  ;;  %v1380_v27 = vpop.f32.mrb[41].mxu1 }
 0x3b4   : > { %v1381_v28 = vadd.f32 %v2469_v13, %v1380_v27  ;;  %v1885_v29 = vpop.f32.mrb[42].mxu1 }
 0x3b5   : > { %1473 = vst [vmem:[%s2474_s29 + $0x70] sm:$0xff] %v1389_v26  ;;  %v1392_v30 = vadd.f32 %v1885_v29, %v2469_v13  ;;  %v1383_v31 = vpop.f32.mrb[43].mxu1 }
 0x3b6   : > { %1471 = vst [vmem:[%s2474_s29 + $0x60] sm:$0xff] %v1381_v28  ;;  %v1384_v33 = vadd.f32 %v2469_v13, %v1383_v31 }
 0x3b7   : > { %1474 = vst [vmem:[%s2474_s29 + $0x78] sm:$0xff] %v1392_v30 }
 0x3b8   : > { %1472 = vst [vmem:[%s2474_s29 + $0x68] sm:$0xff] %v1384_v33 }
 0x3ba   : > { %v1888_v34 = vpop.f32.mrb[44].mxu1 }
 0x3bb   : > { %v1405_v23 = vadd.f32 %v1888_v34, %v2469_v13  ;;  %v1396_v35 = vpop.f32.mrb[45].mxu1 }
 0x3bc   : > { %v1397_v36 = vadd.f32 %v2469_v13, %v1396_v35  ;;  %v1889_v37 = vpop.f32.mrb[46].mxu1 }
 0x3bd   : > { %1477 = vst [vmem:[%s2474_s29 + $0x90] sm:$0xff] %v1405_v23  ;;  %v1408_v38 = vadd.f32 %v1889_v37, %v2469_v13  ;;  %v1399_v39 = vpop.f32.mrb[47].mxu1 }
 0x3be   : > { %1475 = vst [vmem:[%s2474_s29 + $0x80] sm:$0xff] %v1397_v36  ;;  %v1400_v40 = vadd.f32 %v2469_v13, %v1399_v39 }
 0x3bf   : > { %1478 = vst [vmem:[%s2474_s29 + $0x98] sm:$0xff] %v1408_v38 }
 0x3c0   : > { %1476 = vst [vmem:[%s2474_s29 + $0x88] sm:$0xff] %v1400_v40 }
 0x3c2   : > { %v1892_v41 = vpop.f32.mrb[48].mxu1 }
 0x3c3   : > { %v1421_v42 = vadd.f32 %v1892_v41, %v2469_v13  ;;  %v1412_v43 = vpop.f32.mrb[49].mxu1 }
 0x3c4   : > { %v1413_v44 = vadd.f32 %v2469_v13, %v1412_v43  ;;  %v1893_v45 = vpop.f32.mrb[50].mxu1 }
 0x3c5   : > { %1481 = vst [vmem:[%s2474_s29 + $0xb0] sm:$0xff] %v1421_v42  ;;  %v1424_v46 = vadd.f32 %v1893_v45, %v2469_v13  ;;  %v1415_v47 = vpop.f32.mrb[51].mxu1 }
 0x3c6   : > { %1479 = vst [vmem:[%s2474_s29 + $0xa0] sm:$0xff] %v1413_v44  ;;  %v1416_v48 = vadd.f32 %v2469_v13, %v1415_v47 }
 0x3c7   : > { %1482 = vst [vmem:[%s2474_s29 + $0xb8] sm:$0xff] %v1424_v46 }
 0x3c8   : > { %1480 = vst [vmem:[%s2474_s29 + $0xa8] sm:$0xff] %v1416_v48 }
 0x3ca   : > { %v1896_v49 = vpop.f32.mrb[52].mxu1 }
 0x3cb   : > { %v1437_v50 = vadd.f32 %v1896_v49, %v2469_v13  ;;  %v1428_v51 = vpop.f32.mrb[53].mxu1 }
 0x3cc   : > { %v1429_v52 = vadd.f32 %v2469_v13, %v1428_v51  ;;  %v1897_v53 = vpop.f32.mrb[54].mxu1 }
 0x3cd   : > { %1485 = vst [vmem:[%s2474_s29 + $0xd0] sm:$0xff] %v1437_v50  ;;  %v1440_v54 = vadd.f32 %v1897_v53, %v2469_v13  ;;  %v1431_v55 = vpop.f32.mrb[55].mxu1 }
 0x3ce   : > { %1483 = vst [vmem:[%s2474_s29 + $0xc0] sm:$0xff] %v1429_v52  ;;  %v1432_v56 = vadd.f32 %v2469_v13, %v1431_v55 }
 0x3cf   : > { %1486 = vst [vmem:[%s2474_s29 + $0xd8] sm:$0xff] %v1440_v54 }
 0x3d0   : > { %1484 = vst [vmem:[%s2474_s29 + $0xc8] sm:$0xff] %v1432_v56 }
 0x3d2   : > { %v1900_v57 = vpop.f32.mrb[56].mxu1 }
 0x3d3   : > { %v1453_v58 = vadd.f32 %v1900_v57, %v2469_v13  ;;  %v1444_v59 = vpop.f32.mrb[57].mxu1 }
 0x3d4   : > { %v1445_v60 = vadd.f32 %v2469_v13, %v1444_v59  ;;  %v1901_v61 = vpop.f32.mrb[58].mxu1 }
 0x3d5   : > { %1489 = vst [vmem:[%s2474_s29 + $0xf0] sm:$0xff] %v1453_v58  ;;  %v1456_v62 = vadd.f32 %v1901_v61, %v2469_v13  ;;  %v1447_v63 = vpop.f32.mrb[59].mxu1 }
 0x3d6   : > { %1487 = vst [vmem:[%s2474_s29 + $0xe0] sm:$0xff] %v1445_v60  ;;  %v1448_v0 = vadd.f32 %v2469_v13, %v1447_v63 }
 0x3d7   : > { %1490 = vst [vmem:[%s2474_s29 + $0xf8] sm:$0xff] %v1456_v62 }
 0x3d8   : > { %1488 = vst [vmem:[%s2474_s29 + $0xe8] sm:$0xff] %v1448_v0 }
 0x3d9 PF: > { %s17_s24 = sadd.s32 1, %s2165_s24  }
 0x3da   : > { %p14_p4 = scmp.ge.s32.totalorder %s17_s24, 4  }
 0x3dc   :  { %16 = sbr.rel (!%p14_p4) target bundleno = 1 (0x1), region = 80 }

</bundles_post_ra>
